<compile_context>
chip_gen: v7x
topology: tpu7x:2x2x1
jax: 0.10.0
libtpu: 0.0.40
codegen_flags: <defaults>
</compile_context>

<pallas_src>
import functools

import jax
import jax.numpy as jnp
from jax import lax
from jax.experimental import pallas as pl
from jax.experimental.pallas import tpu as pltpu

EPS = 1e-5


def _compiler_params():
    return pltpu.CompilerParams(
        dimension_semantics=("parallel",),          # batch grid axis -> megacore on v7x
        vmem_limit_bytes=32 * 1024 * 1024,
    )


def _stats(h):
    # per-channel (sum, sum of squares) over the spatial/lane axis -> (C, 2)
    s = jnp.sum(h, axis=1, keepdims=True)
    ss = jnp.sum(h * h, axis=1, keepdims=True)
    return jnp.concatenate([s, ss], axis=1)


# ----------------------- pass 1: 1x1 conv (+ stat partials) -----------------------
def _conv1x1_stats_kernel(x_ref, w_ref, y_ref, st_ref, *, mm_dtype):
    act = x_ref[0]                                                 # (Cin, HW)
    h = jnp.dot(w_ref[...].astype(mm_dtype), act.astype(mm_dtype),
                preferred_element_type=jnp.float32)                # (Cout, HW)
    y_ref[...] = h[None]
    st_ref[...] = _stats(h)[None]


def _conv1x1_stats(x2, w, *, mm_dtype):
    N, Cin, HW = x2.shape
    Cout = w.shape[0]
    cost = pl.CostEstimate(
        flops=2 * N * HW * Cin * Cout, transcendentals=0,
        bytes_accessed=4 * (x2.size + w.size + N * Cout * (HW + 2)))
    return pl.pallas_call(
        functools.partial(_conv1x1_stats_kernel, mm_dtype=mm_dtype),
        grid=(N,),
        in_specs=[pl.BlockSpec((1, Cin, HW), lambda n: (n, 0, 0)),
                  pl.BlockSpec((Cout, Cin), lambda n: (0, 0))],
        out_specs=(pl.BlockSpec((1, Cout, HW), lambda n: (n, 0, 0)),
                   pl.BlockSpec((1, Cout, 2), lambda n: (n, 0, 0))),
        out_shape=(jax.ShapeDtypeStruct((N, Cout, HW), jnp.float32),
                   jax.ShapeDtypeStruct((N, Cout, 2), jnp.float32)),
        compiler_params=_compiler_params(),
        cost_estimate=cost,
    )(x2, w)


# ------------- pass 2: fused BN-affine + ReLU -> 3x3 conv (+ stat partials) -------------
def _bn_relu_conv3x3_stats_kernel(y_ref, a_ref, b_ref, w_ref, o_ref, st_ref,
                                  *, H, W, K, mm_dtype):
    HW = H * W
    P = (K - 1) // 2
    # fused BatchNorm affine + ReLU, fully lane-dense (channels on sublanes)
    act = jnp.maximum(y_ref[0] * a_ref[...] + b_ref[...], 0.0)     # (C1, HW)

    # im2col slab: K*K spatially shifted, zero-masked copies stacked on sublanes.
    # pltpu.roll is an XLU rotate; the masks realize the zero padding / row edges.
    lane = lax.broadcasted_iota(jnp.int32, (1, HW), 1)
    h_idx = lane // W
    w_idx = lane % W
    taps = []
    for kh in range(K):
        for kw in range(K):
            dh, dw = kh - P, kw - P
            s = dh * W + dw
            shifted = act if s == 0 else pltpu.roll(act, (-s) % HW, 1)
            valid = ((h_idx + dh >= 0) & (h_idx + dh < H) &
                     (w_idx + dw >= 0) & (w_idx + dw < W))
            taps.append(jnp.where(valid, shifted, 0.0))
    cols = jnp.concatenate(taps, axis=0)                           # (K*K*C1, HW)

    h = jnp.dot(w_ref[...].astype(mm_dtype), cols.astype(mm_dtype),
                preferred_element_type=jnp.float32)                # (C2, HW)
    o_ref[...] = h[None]
    st_ref[...] = _stats(h)[None]


def _bn_relu_conv3x3_stats(y1, a, b, w2cols, *, H, W, K, mm_dtype):
    N, C1, HW = y1.shape
    C2 = w2cols.shape[0]
    cost = pl.CostEstimate(
        flops=2 * N * HW * K * K * C1 * C2, transcendentals=0,
        bytes_accessed=4 * (y1.size + w2cols.size + 2 * C1 + N * C2 * (HW + 2)))
    kern = functools.partial(_bn_relu_conv3x3_stats_kernel,
                             H=H, W=W, K=K, mm_dtype=mm_dtype)
    return pl.pallas_call(
        kern,
        grid=(N,),
        in_specs=[pl.BlockSpec((1, C1, HW), lambda n: (n, 0, 0)),
                  pl.BlockSpec((C1, 1), lambda n: (0, 0)),
                  pl.BlockSpec((C1, 1), lambda n: (0, 0)),
                  pl.BlockSpec((C2, K * K * C1), lambda n: (0, 0))],
        out_specs=(pl.BlockSpec((1, C2, HW), lambda n: (n, 0, 0)),
                   pl.BlockSpec((1, C2, 2), lambda n: (n, 0, 0))),
        out_shape=(jax.ShapeDtypeStruct((N, C2, HW), jnp.float32),
                   jax.ShapeDtypeStruct((N, C2, 2), jnp.float32)),
        compiler_params=_compiler_params(),
        cost_estimate=cost,
    )(y1, a, b, w2cols)


# ------------- pass 3: fused BN-affine + ReLU -> 1x1 conv (+ stat partials) -------------
def _bn_relu_conv1x1_stats_kernel(y_ref, a_ref, b_ref, w_ref, o_ref, st_ref, *, mm_dtype):
    act = jnp.maximum(y_ref[0] * a_ref[...] + b_ref[...], 0.0)     # (C2, HW)
    h = jnp.dot(w_ref[...].astype(mm_dtype), act.astype(mm_dtype),
                preferred_element_type=jnp.float32)                # (Cout, HW)
    o_ref[...] = h[None]
    st_ref[...] = _stats(h)[None]


def _bn_relu_conv1x1_stats(y2, a, b, w, *, mm_dtype):
    N, C2, HW = y2.shape
    Cout = w.shape[0]
    cost = pl.CostEstimate(
        flops=2 * N * HW * C2 * Cout, transcendentals=0,
        bytes_accessed=4 * (y2.size + w.size + 2 * C2 + N * Cout * (HW + 2)))
    return pl.pallas_call(
        functools.partial(_bn_relu_conv1x1_stats_kernel, mm_dtype=mm_dtype),
        grid=(N,),
        in_specs=[pl.BlockSpec((1, C2, HW), lambda n: (n, 0, 0)),
                  pl.BlockSpec((C2, 1), lambda n: (0, 0)),
                  pl.BlockSpec((C2, 1), lambda n: (0, 0)),
                  pl.BlockSpec((Cout, C2), lambda n: (0, 0))],
        out_specs=(pl.BlockSpec((1, Cout, HW), lambda n: (n, 0, 0)),
                   pl.BlockSpec((1, Cout, 2), lambda n: (n, 0, 0))),
        out_shape=(jax.ShapeDtypeStruct((N, Cout, HW), jnp.float32),
                   jax.ShapeDtypeStruct((N, Cout, 2), jnp.float32)),
        compiler_params=_compiler_params(),
        cost_estimate=cost,
    )(y2, a, b, w)


# ----------------- pass 4: fused BN-affine + residual add + ReLU (dense) -----------------
def _bn_add_relu_kernel(y_ref, x_ref, a_ref, b_ref, o_ref):
    o_ref[...] = jnp.maximum(y_ref[0] * a_ref[...] + b_ref[...] + x_ref[0], 0.0)[None]


def _bn_add_relu(y3, x2, a, b):
    N, C, HW = y3.shape
    cost = pl.CostEstimate(
        flops=4 * N * C * HW, transcendentals=0,
        bytes_accessed=4 * (2 * y3.size + x2.size + 2 * C))
    return pl.pallas_call(
        _bn_add_relu_kernel,
        grid=(N,),
        in_specs=[pl.BlockSpec((1, C, HW), lambda n: (n, 0, 0)),
                  pl.BlockSpec((1, C, HW), lambda n: (n, 0, 0)),
                  pl.BlockSpec((C, 1), lambda n: (0, 0)),
                  pl.BlockSpec((C, 1), lambda n: (0, 0))],
        out_specs=pl.BlockSpec((1, C, HW), lambda n: (n, 0, 0)),
        out_shape=jax.ShapeDtypeStruct((N, C, HW), jnp.float32),
        compiler_params=_compiler_params(),
        cost_estimate=cost,
    )(y3, x2, a, b)


# --------------------------------- public wrapper ---------------------------------
def resnet101_basic_block(x_nchw, params, *, kernel_size=(1, 3, 1), stride=(1, 1, 1),
                          padding=(0, 1, 0), mm_dtype=jnp.float32):
    """Pallas implementation of ResNet101BasicBlock.forward (training-mode BatchNorm).

    params holds PyTorch-layout tensors:
        w1 (C1,Cin,1,1) b1 (C1,) g1 (C1,) be1 (C1,)
        w2 (C2,C1,K,K)  b2 (C2,) g2 (C2,) be2 (C2,)
        w3 (Cin,C2,1,1) b3 (Cin,) g3 (Cin,) be3 (Cin,)
    Conv biases are accepted but unused: training-mode BN subtracts the batch mean,
    which cancels per-channel pre-BN biases exactly.
    """
    assert kernel_size[0] == 1 and kernel_size[2] == 1, "1x1-KxK-1x1 bottleneck only"
    assert all(s == 1 for s in stride), "residual add requires stride 1"
    K = kernel_size[1]
    assert padding[0] == 0 and padding[2] == 0 and padding[1] == (K - 1) // 2, \
        "spatial size must be preserved"

    N, Cin, H, W = x_nchw.shape
    HW = H * W
    C1 = params["w1"].shape[0]
    C2 = params["w2"].shape[0]
    assert params["w3"].shape[0] == Cin, "residual add requires outs[2] == in_channel"

    # channels-on-sublanes / spatial-on-lanes layout: a free reshape from NCHW.
    x2 = x_nchw.reshape(N, Cin, HW).astype(jnp.float32)

    w1 = params["w1"].reshape(C1, Cin).astype(jnp.float32)                       # (C1, Cin)
    w2 = jnp.transpose(params["w2"], (0, 2, 3, 1)).reshape(C2, K * K * C1)        # (C2, K*K*C1)
    w2 = w2.astype(jnp.float32)
    w3 = params["w3"].reshape(Cin, C2).astype(jnp.float32)                        # (Cin, C2)

    count = N * HW

    def bn_affine(stats, g, be):
        tot = jnp.sum(stats, axis=0)                       # (C, 2) cross-batch reduce
        mu = tot[:, 0] / count
        var = tot[:, 1] / count - mu * mu                  # biased batch variance
        a = jnp.asarray(g, jnp.float32) * lax.rsqrt(var + EPS)
        b = jnp.asarray(be, jnp.float32) - mu * a
        return a.reshape(-1, 1), b.reshape(-1, 1)

    y1, st1 = _conv1x1_stats(x2, w1, mm_dtype=mm_dtype)
    a1, b1 = bn_affine(st1, params["g1"], params["be1"])
    y2, st2 = _bn_relu_conv3x3_stats(y1, a1, b1, w2, H=H, W=W, K=K, mm_dtype=mm_dtype)
    a2, b2 = bn_affine(st2, params["g2"], params["be2"])
    y3, st3 = _bn_relu_conv1x1_stats(y2, a2, b2, w3, mm_dtype=mm_dtype)
    a3, b3 = bn_affine(st3, params["g3"], params["be3"])
    out2 = _bn_add_relu(y3, x2, a3, b3)

    return out2.reshape(N, Cin, H, W)


# ---------------- pure-JAX reference (for correctness check) ----------------
def _ref_forward(x, p):
    def conv(x, w, b, pad):
        y = lax.conv_general_dilated(x, w, (1, 1), [(pad, pad), (pad, pad)],
                                     dimension_numbers=("NCHW", "OIHW", "NCHW"))
        return y + b[None, :, None, None]

    def bn(x, g, be):
        mu = x.mean(axis=(0, 2, 3), keepdims=True)
        var = ((x - mu) ** 2).mean(axis=(0, 2, 3), keepdims=True)
        return (x - mu) * lax.rsqrt(var + EPS) * g[None, :, None, None] + be[None, :, None, None]

    h = jax.nn.relu(bn(conv(x, p["w1"], p["b1"], 0), p["g1"], p["be1"]))
    h = jax.nn.relu(bn(conv(h, p["w2"], p["b2"], 1), p["g2"], p["be2"]))
    h = bn(conv(h, p["w3"], p["b3"], 0), p["g3"], p["be3"])
    return jax.nn.relu(h + x)


if __name__ == "__main__":
    # Module config: ResNet101BasicBlock(in_channel=16, outs=[8, 8, 16],
    #                                    kernel_size=[1, 3, 1], stride=[1, 1, 1],
    #                                    padding=[0, 1, 0])
    N, Cin, H, W = 2, 16, 16, 16
    outs = (8, 8, 16)

    key = jax.random.PRNGKey(0)
    kx, k1, k2, k3, kb1, kb2, kb3 = jax.random.split(key, 7)

    x = jax.random.normal(kx, (N, Cin, H, W), jnp.float32)
    params = {
        "w1": jax.random.normal(k1, (outs[0], Cin, 1, 1), jnp.float32) * 0.1,
        "b1": jax.random.normal(kb1, (outs[0],), jnp.float32) * 0.05,
        "g1": jnp.ones((outs[0],), jnp.float32),
        "be1": jnp.zeros((outs[0],), jnp.float32),
        "w2": jax.random.normal(k2, (outs[1], outs[0], 3, 3), jnp.float32) * 0.1,
        "b2": jax.random.normal(kb2, (outs[1],), jnp.float32) * 0.05,
        "g2": jnp.ones((outs[1],), jnp.float32),
        "be2": jnp.zeros((outs[1],), jnp.float32),
        "w3": jax.random.normal(k3, (outs[2], outs[1], 1, 1), jnp.float32) * 0.1,
        "b3": jax.random.normal(kb3, (outs[2],), jnp.float32) * 0.05,
        "g3": jnp.ones((outs[2],), jnp.float32),
        "be3": jnp.zeros((outs[2],), jnp.float32),
    }

    out = resnet101_basic_block(x, params)
    out = jax.block_until_ready(out)

    ref = _ref_forward(x, params)
    assert out.shape == (N, Cin, H, W)
    assert jnp.allclose(out, ref, atol=1e-3, rtol=1e-3), float(jnp.max(jnp.abs(out - ref)))

    print("KERNEL_OK")
</pallas_src>

<mosaic_0001>
module attributes {stable_mosaic.version = 11 : i64} {
  func.func @_conv1x1_stats_kernel(%arg0: i32, %arg1: memref<1x16x256xf32, #tpu.memory_space<vmem>>, %arg2: memref<8x16xf32, #tpu.memory_space<vmem>>, %arg3: memref<1x8x256xf32, #tpu.memory_space<vmem>>, %arg4: memref<1x8x2xf32, #tpu.memory_space<vmem>>) attributes {dimension_semantics = [#tpu.dimension_semantics<parallel>], iteration_bounds = array<i64: 2>, scalar_prefetch = 0 : i64, scratch_operands = 0 : i64, tpu.core_type = #tpu.core_type<tc>, window_params = [{transform_indices = @transform_0, window_bounds = array<i64: 1, 16, 256>}, {pipeline_mode = #tpu.pipeline_mode<synchronous>, transform_indices = @transform_1, window_bounds = array<i64: 8, 16>}, {transform_indices = @transform_2, window_bounds = array<i64: 1, 8, 256>}, {transform_indices = @transform_3, window_bounds = array<i64: 1, 8, 2>}]} {
    %c0 = arith.constant 0 : index
    %c0_0 = arith.constant 0 : index
    %c0_1 = arith.constant 0 : index
    %0 = vector.load %arg1[%c0, %c0_0, %c0_1] : memref<1x16x256xf32, #tpu.memory_space<vmem>>, vector<1x16x256xf32>
    %1 = vector.shape_cast %0 : vector<1x16x256xf32> to vector<16x256xf32>
    %c0_2 = arith.constant 0 : index
    %c0_3 = arith.constant 0 : index
    %2 = vector.load %arg2[%c0_2, %c0_3] : memref<8x16xf32, #tpu.memory_space<vmem>>, vector<8x16xf32>
    %cst = arith.constant dense<0.000000e+00> : vector<8x256xf32>
    %3 = tpu.matmul %2, %1, %cst {dimension_numbers = #tpu.dot_dimension_numbers<[1], [0], [0], [1], [0, 0, 1, 1], [], []>} : vector<8x16xf32>, vector<16x256xf32>, vector<8x256xf32> -> vector<8x256xf32>
    %4 = vector.shape_cast %3 : vector<8x256xf32> to vector<1x8x256xf32>
    %c0_4 = arith.constant 0 : index
    %c0_5 = arith.constant 0 : index
    %c0_6 = arith.constant 0 : index
    %5 = vector.load %arg3[%c0_4, %c0_5, %c0_6] : memref<1x8x256xf32, #tpu.memory_space<vmem>>, vector<1x8x256xf32>
    tpu.vector_store %arg3[%c0_4, %c0_5, %c0_6], %4 {strides = array<i32>} : memref<1x8x256xf32, #tpu.memory_space<vmem>>, vector<1x8x256xf32>,
    %cst_7 = arith.constant dense<0.000000e+00> : vector<8xf32>
    %6 = vector.multi_reduction <add>, %3, %cst_7 [1] : vector<8x256xf32> to vector<8xf32>
    %7 = vector.shape_cast %6 : vector<8xf32> to vector<8x1xf32>
    %8 = arith.mulf %3, %3 : vector<8x256xf32>
    %cst_8 = arith.constant dense<0.000000e+00> : vector<8xf32>
    %9 = vector.multi_reduction <add>, %8, %cst_8 [1] : vector<8x256xf32> to vector<8xf32>
    %10 = vector.shape_cast %9 : vector<8xf32> to vector<8x1xf32>
    %11 = tpu.concatenate %7, %10 in 1 : vector<8x1xf32>, vector<8x1xf32> -> vector<8x2xf32>
    %12 = vector.shape_cast %11 : vector<8x2xf32> to vector<1x8x2xf32>
    %c0_9 = arith.constant 0 : index
    %c0_10 = arith.constant 0 : index
    %c0_11 = arith.constant 0 : index
    %13 = vector.load %arg4[%c0_9, %c0_10, %c0_11] : memref<1x8x2xf32, #tpu.memory_space<vmem>>, vector<1x8x2xf32>
    tpu.vector_store %arg4[%c0_9, %c0_10, %c0_11], %12 {strides = array<i32>} : memref<1x8x2xf32, #tpu.memory_space<vmem>>, vector<1x8x2xf32>,
    return
  }
  func.func @transform_0(%arg0: i32) -> (i32, i32, i32) {
    %c0_i32 = arith.constant 0 : i32
    %c0_i32_0 = arith.constant 0 : i32
    %c0_i32_1 = arith.constant 0 : i32
    return %arg0, %c0_i32, %c0_i32_0 : i32, i32, i32
  }
  func.func @transform_1(%arg0: i32) -> (i32, i32) {
    %c0_i32 = arith.constant 0 : i32
    %c0_i32_0 = arith.constant 0 : i32
    %c0_i32_1 = arith.constant 0 : i32
    return %c0_i32, %c0_i32_0 : i32, i32
  }
  func.func @transform_2(%arg0: i32) -> (i32, i32, i32) {
    %c0_i32 = arith.constant 0 : i32
    %c0_i32_0 = arith.constant 0 : i32
    %c0_i32_1 = arith.constant 0 : i32
    return %arg0, %c0_i32, %c0_i32_0 : i32, i32, i32
  }
  func.func @transform_3(%arg0: i32) -> (i32, i32, i32) {
    %c0_i32 = arith.constant 0 : i32
    %c0_i32_0 = arith.constant 0 : i32
    %c0_i32_1 = arith.constant 0 : i32
    return %arg0, %c0_i32, %c0_i32_0 : i32, i32, i32
  }
}

</mosaic_0001>

<bundles_post_ra>
// kernel: tpu_custom_call.1
= control target key start
LH: loop header
LB: loop body
LE: loop exit
PB: predicated region body
PF: predicated region fallthrough
CT: control target
= control target key end

     0   :  { %9 = vsyncpa [#allocation3], 0  ;;  %s868_s0 = inlined_call_operand.hbm [shape: f32[2,16,256], index: 0, kind: input, shape index: {}]   ;;  %s869_s1 = inlined_call_operand.hbm [shape: f32[8,16], index: 1, kind: input, shape index: {}]   ;;  %s870_s2 = inlined_call_operand.hbm [shape: f32[2,8,256], index: 2, kind: output, shape index: {0}]   ;;  %s871_s3 = inlined_call_operand.vmem [shape: f32[2,8,2], index: 3, kind: output, shape index: {1}]  }
   0x1   :  { %11 = vsyncpa [#allocation3 + $0x1], 0 }
   0x2   :  { %12 = vsyncpa [#allocation6], 0 }
   0x3   :  { %13 = vsyncpa [#allocation4], 0 }
   0x4   :  { %15 = vsyncpa [#allocation4 + $0x1], 0  ;;  %s673_s12 = smov 0   ;;  %s675_s13 = smov 0  }
   0x5   :  { %s677_s14 = smov 0   ;;  %s679_s15 = smov 0  }
   0x6 LB: > { %s694_s16 = sadd.s32 4294967295, %s645_s15   ;;  %s433_s17 = sadd.s32 4294967294, %s645_s15   ;;  %s645_s15 = sphi %s679_s15, %s896_s15   ;;  %s641_s14 = sphi %s677_s14, %s895_s14   ;;  %s637_s13 = sphi %s675_s13, %s894_s13   ;;  %s633_s12 = sphi %s673_s12, %s893_s12  }
   0x7   : > { %s698_s18 = sadd.s32 1, %s645_s15   ;;  %s28_s19 = sadd.s32 1, %s641_s14 }
   0x8   : > { %s25_s20 = ssub.s32 %s645_s15, %s698_s18  ;;  %p35_p0 = scmp.ne.s32.totalorder %s641_s14, %s637_s13 }
   0x9   : > { %p26_p1 = scmp.eq.s32.totalorder %s25_s20, 0  ;;  %p36_p2 = scmp.eq.s32.totalorder %s645_s15, 0 }
   0xa   : > { %p41_p3 = scmp.ne.s32.totalorder %s637_s13, %s633_s12  ;;  %p872_p4 = scmp.eq.s32.totalorder %s694_s16, 0 }
   0xb   : > { %s710_s21 = scalar_select %p26_p1, %s641_s14, %s28_s19  }
   0xc   : > { %p712_p5 = por %p36_p2, %p35_p0  ;;  %p718_p6 = por %p872_p4, %p41_p3 }
   0xd   : > { %p86_p7 = scmp.eq.s32.totalorder %s694_s16, 1  ;;  %p92_p8 = scmp.eq.s32.totalorder %s433_s17, 1 }
   0xe   : > { %s878_s23 = scalar_select %p718_p6, 1, 0 }
   0xf   : > { %p434_p9 = scmp.ge.s32.totalorder %s645_s15, 1  ;;  %p125_p10 = scmp.lt.s32.totalorder %s645_s15, 3 }
  0x10   : > { %p725_p11 = por %p86_p7, %p35_p0  ;;  %p729_p12 = por %p92_p8, %p41_p3 }
  0x11   : > { %p733_p13 = pnand %p434_p9, %p125_p10  ;;  %s647_s27 = smov [#allocation5]  }
  0x12   : > { %s879_s24 = scalar_select %p725_p11, 1, 0 }
  0x13   : > { %s880_s25 = scalar_select %p729_p12, 1, 0 }
  0x14   : > { %s881_s26 = scalar_select %p733_p13, 1, 0 }
  0x15   : > { %p465_p2 = pneg %p733_p13  ;;  %s138_s28 = sshll.u32 %s647_s27, 4  ;;  %s139_s28 = int_to_ptr.vmem [resolvable:$true] %s138_s28 }
  0x16   : > { %p478_p4 = scmp.lt.s32.totalorder %s645_s15, 2  ;;  %p882_p0 = scmp.eq.s32.totalorder %s694_s16, 0 }
  0x17   : > { %s149_s30 = sand.u32 1, %s641_s14   ;;  %s517_s8 = scalar_lea.hbm %s869_s1, 128 }
  0x18   : > { %p743_p7 = pnand %p465_p2, %p882_p0  ;;  %p750_p3 = pnand %p478_p4, %p712_p5 }
  0x19   : > { %s437_s5 = sshll.u32 %s149_s30, 5  ;;  %p518_p8 = scmp.ne.s32.totalorder %s869_s1, %s517_s8 }
  0x1a   : > { %s884_s4 = scalar_select %p750_p3, 1, 0 }
  0x1b   : > { %p519_p9 = pneg %p743_p7  ;;  %p524_p4 = scmp.lt.u32.totalorder %s517_s8, %s869_s1 }
  0x1d   : > { %p520_p10 = pnand %p519_p9, %p518_p8 }
  0x1f   : > { %p521_p2 = pneg %p520_p10 }
  0x21   : > { %p526_p5 = pnand %p524_p4, %p521_p2 }
  0x23   : > { %529 = shalt.err (!%p526_p5)
}
  0x24   : > { %s530_s19 = scalar_lea.vmem %s139_s28, 128  ;;  %p538_p11 = scmp.lt.s32.totalorder %s139_s28, %s139_s28 }
  0x25   : > { %p531_p0 = scmp.ne.s32.totalorder %s139_s28, %s530_s19  ;;  %p539_p6 = scmp.lt.s32.totalorder %s530_s19, %s530_s19 }
  0x27   : > { %p533_p1 = pnand %p531_p0, %p519_p9  ;;  %p540_p13 = por %p539_p6, %p538_p11 }
  0x29   : > { %p534_p12 = pneg %p533_p1 }
  0x2b   : > { %p541_p3 = pnand %p540_p13, %p534_p12 }
  0x2d   : > { %544 = shalt.err (!%p541_p3)
}
  0x2e   : > { %468 = dma.hbm_to_vmem [thread:$0]  (!%p743_p7), %s869_s1, 128, %s139_s28, [#allocation6]  }
  0x2f   : > { %s451_s27 = sshll.u32 %s645_s15, 9  ;;  %s153_s6 = scalar_lea.vmem [#allocation2], %s437_s5 }
  0x30   : > { %s160_s7 = sshll.u32 %s153_s6, 4  ;;  %s774_s10 = scalar_lea.hbm %s868_s0, %s451_s27  ;;  %s776_s7 = int_to_ptr.vmem [resolvable:$true] %s160_s7 }
  0x31   : > { %s778_s29 = scalar_lea.sflag [#allocation3], %s149_s30  ;;  %s545_s11 = scalar_lea.hbm %s774_s10, 512 }
  0x32   : > { %p546_p6 = scmp.ne.s32.totalorder %s774_s10, %s545_s11  ;;  %p885_p11 = scmp.ne.s32.totalorder %s884_s4, 0 }
  0x33   : > { %s550_s17 = scalar_lea.hbm %s868_s0, 1024  ;;  %p551_p7 = scmp.lt.u32.totalorder %s774_s10, %s868_s0 }
  0x34   : > { %p547_p12 = pneg %p885_p11  ;;  %p552_p3 = scmp.lt.u32.totalorder %s550_s17, %s545_s11 }
  0x35   : > { %p554_p9 = scmp.lt.u32.totalorder %s545_s11, %s774_s10 }
  0x36   : > { %p548_p13 = pnand %p547_p12, %p546_p6  ;;  %p553_p8 = por %p552_p3, %p551_p7 }
  0x38   : > { %p549_p1 = pneg %p548_p13  ;;  %p555_p10 = por %p554_p9, %p553_p8 }
  0x3a   : > { %p556_p2 = pnand %p555_p10, %p549_p1 }
  0x3c   : > { %559 = shalt.err (!%p556_p2)
}
  0x3d   : > { %s560_s30 = scalar_lea.vmem %s776_s7, 512  ;;  %s648_s22 = smov [#allocation2]  }
  0x3e   : > { %p561_p4 = scmp.ne.s32.totalorder %s776_s7, %s560_s30  ;;  %s565_s27 = sshll.u32 %s648_s22, 4  ;;  %s566_s27 = int_to_ptr.vmem [resolvable:$false] %s565_s27 }
  0x3f   : > { %s567_s6 = scalar_lea.vmem %s566_s27, 1024  ;;  %p568_p6 = scmp.lt.s32.totalorder %s776_s7, %s566_s27 }
  0x40   : > { %p563_p5 = pnand %p561_p4, %p547_p12  ;;  %p569_p13 = scmp.lt.s32.totalorder %s567_s6, %s560_s30 }
  0x42   : > { %p564_p0 = pneg %p563_p5  ;;  %p570_p7 = por %p569_p13, %p568_p6 }
  0x44   : > { %p571_p3 = pnand %p570_p7, %p564_p0 }
  0x46   : > { %574 = shalt.err (!%p571_p3)
}
  0x47   : > { %s649_s8 = smov 256   ;;  %s650_s9 = smov 16  }
  0x48   : > { %472 = dma.hbm_to_vmem [thread:$0]  (!%p885_p11), %s774_s10, 512, %s776_s7, %s778_s29, %s649_s8, %s649_s8, %s650_s9  }
  0x49   : > { %p886_p12 = scmp.ne.s32.totalorder %s881_s26, 0 }
  0x4a   : > { %s809_s11 = sand.u32 (!%p886_p12), 1, %s637_s13   ;;  %p887_p1 = scmp.ne.s32.totalorder (!%p886_p12), %s878_s23, 0 }
  0x4b   : > { %172 = sbr.rel (%p886_p12) target bundleno = 456 (0x1c8), region = 28  ;;  %s441_s28 = sshll.u32 (!%p886_p12), %s809_s11, 5 }
  0x4c   : > { %s175_s5 = scalar_lea.sflag (!%p886_p12), [#allocation3], %s809_s11  ;;  %s178_s17 = scalar_lea.vmem (!%p886_p12), [#allocation2], %s441_s28 }
  0x52   : > { %620 = dma.done.wait (%p887_p1), %s175_s5, 512  }
  0x53   : > { %622 = vsyncadd (%p887_p1), %s175_s5, 4294966784  ;;  %p888_p8 = scmp.eq.s32.totalorder %s694_s16, 0 }
  0x55   : > { %624 = dma.done.wait (%p888_p8), [#allocation6], 128   ;;  %p889_p11 = pmov %p888_p8 }
  0x56   : > { %v651_v0 = vmov 0.0   ;;  %v214_v1 = vld [vmem:[%s178_s17 + $0x8] sm:$0xff]  ;;  %v216_v2 = vld [vmem:[%s178_s17 + $0x18] sm:$0xff]  ;;  %v213_v3 = vld [vmem:[%s178_s17] sm:$0xff]  ;;  %vm218_vm0 = vcmask 130048   ;;  %s443_s23 = sshll.u32 %s809_s11, 4 }
  0x57   : > { %626 = vsyncadd (%p889_p11), [#allocation6], 4294967168  ;;  %286 = vmatprep.mubr.f32.mxu0 %v651_v0  ;;  %v453_v4 = vpack.c.bf16 %v216_v2, %v214_v1  ;;  %v215_v5 = vld [vmem:[%s178_s17 + $0x10] sm:$0xff]  ;;  %v217_v7 = vld [vmem:[#allocation5] sm:$0xff]  ;;  %s202_s26 = scalar_lea.vmem [#allocation7], %s443_s23  ;;  %s452_s7 = sshll.u32 %s694_s16, 8 }
  0x58   : > { %v455_v6 = vpack.c.bf16 %v215_v5, %v213_v3  ;;  %s326_s4 = sshll.u32 %s202_s26, 4  ;;  %s324_s19 = scalar_lea.hbm %s870_s2, %s452_s7  ;;  %s822_s4 = int_to_ptr.vmem [resolvable:$true] %s326_s4 }
  0x59   : > { %454 = vmatprep.subr.bf16.mxu0 %v453_v4  ;;  %s308_s20 = scalar_lea.sflag [#allocation4], %s809_s11  ;;  %s575_s30 = scalar_lea.vmem %s822_s4, 256 }
  0x5a   : > { %456 = vmatpush1.bf16.msra.mxu0 %v455_v6  ;;  %p576_p9 = scmp.ne.s32.totalorder %s822_s4, %s575_s30  ;;  %p890_p10 = scmp.ne.s32.totalorder %s879_s24, 0 }
  0x5b   : > { %s652_s22 = smov [#allocation7]  }
  0x5c   : > { %p577_p2 = pnand %p576_p9, %p890_p10  ;;  %s579_s27 = sshll.u32 %s652_s22, 4  ;;  %s580_s27 = int_to_ptr.vmem [resolvable:$false] %s579_s27 }
  0x5d   : > { %445 = vmatmul.mubr.msk.f32.vlgmr.msra.gmra.mrb[0].mxu0 %vm218_vm0, %v217_v7  ;;  %s581_s6 = scalar_lea.vmem %s580_s27, 512  ;;  %p582_p5 = scmp.lt.s32.totalorder %s822_s4, %s580_s27 }
  0x5e   : > { %p578_p4 = pneg %p577_p2  ;;  %p583_p0 = scmp.lt.s32.totalorder %s581_s6, %s575_s30 }
  0x60   : > { %p584_p6 = por %p583_p0, %p582_p5 }
  0x62   : > { %p585_p13 = pnand %p584_p6, %p578_p4 }
 0x130   : > { %v288_v8 = vpop.f32.mrb[0].mxu0 }
 0x131   : > { %293 = vst [vmem:[%s202_s26] sm:$0xff] %v288_v8  ;;  %v290_v9 = vpop.f32.mrb[1].mxu0  ;;  %v298_v10 = vmul.f32 %v288_v8, %v288_v8 }
 0x132   : > { %294 = vst [vmem:[%s202_s26 + $0x8] sm:$0xff] %v290_v9  ;;  %v299_v11 = vmul.f32 %v290_v9, %v290_v9  ;;  %v295_v12 = vadd.f32 %v290_v9, %v288_v8 }
 0x134   : > { %296 = vadd.xlane.f32.xlu0 %v295_v12  ;;  %v300_v13 = vadd.f32 %v299_v11, %v298_v10 }
 0x138   : > { %301 = vadd.xlane.f32.xlu0 %v300_v13 }
 0x139   : > { %588 = shalt.err (!%p585_p13)
}
 0x13a   : > { %s589_s8 = scalar_lea.hbm %s324_s19, 256  ;;  %s593_s28 = scalar_lea.hbm %s870_s2, 512 }
 0x13b   : > { %p590_p7 = scmp.ne.s32.totalorder %s324_s19, %s589_s8  ;;  %p594_p1 = scmp.lt.u32.totalorder %s324_s19, %s870_s2 }
 0x13c   : > { %p595_p8 = scmp.lt.u32.totalorder %s593_s28, %s589_s8  ;;  %p597_p9 = scmp.lt.u32.totalorder %s589_s8, %s324_s19 }
 0x13d   : > { %p591_p3 = pnand %p590_p7, %p890_p10 }
 0x13e   : > { %p596_p11 = por %p595_p8, %p594_p1 }
 0x13f   : > { %p592_p12 = pneg %p591_p3 }
 0x140   : > { %p598_p2 = por %p597_p9, %p596_p11 }
 0x142   : > { %p599_p4 = pnand %p598_p2, %p592_p12 }
 0x144   : > { %602 = shalt.err (!%p599_p4)
}
 0x145   : > { %463 = dma.vmem_to_hbm [thread:$0]  (%p890_p10), %s822_s4, 256, %s324_s19, %s308_s20   ;;  %vm303_vm1 = vcmask 7168   ;;  %vm305_vm2 = vcmask 15360  }
 0x146   : > { %p209_p5 = scmp.lt.s32.totalorder %s694_s16, 1 }
 0x148   : > { %s898_s16 = smov (!%p209_p5, %s694_s16), 1 }
 0x149   : > { %s444_s23 = sshll.u32 %s898_s16, 3 }
 0x14a   : > { %s212_s10 = scalar_lea.vmem %s871_s3, %s444_s23 }
 0x1c1   : > { %v297_v14 = vpop.xlane.xlu0 %296 }
 0x1c5   : > { %v302_v15 = vpop.xlane.xlu0 %301 }
 0x1c6   : > { %v304_v16 = vsel %vm303_vm1, %v297_v14, %v302_v15 }
 0x1c7   : > { %306 = vst.msk [vmem:[%s212_s10] sm:$0xff] %vm305_vm2, %v304_v16 }
 0x1c8 PF: > { %s341_s24 = sand.u32 1, %s633_s12   ;;  %p891_p0 = scmp.ne.s32.totalorder %s880_s25, 0 }
 0x1c9   : > { %p892_p10 = scmp.ge.s32.totalorder %s645_s15, 2  ;;  %s342_s4 = scalar_lea.sflag [#allocation4], %s341_s24 }
 0x1cb   : > { %p474_p6 = pnand %p892_p10, %p891_p0 }
 0x1cd   : > { %628 = dma.done.wait (!%p474_p6), %s342_s4, 256  }
 0x1ce   : > { %630 = vsyncadd (!%p474_p6), %s342_s4, 4294967040  ;;  %p18_p13 = scmp.ge.s32.totalorder %s698_s18, 4   ;;  %s893_s12 = smov %s637_s13 }
 0x1cf   : > { %s894_s13 = smov %s641_s14  ;;  %s895_s14 = smov %s710_s21 }
 0x1d0   : > { %s896_s15 = smov %s698_s18  ;;  %20 = sbr.rel (!%p18_p13) target bundleno = 6 (0x6), region = 89 }
 0x1d7   :  { %354 = vsyncpa [#allocation3], 1 }
 0x1d8   :  { %356 = vsyncpa [#allocation3 + $0x1], 1 }
 0x1d9   :  { %357 = vsyncpa [#allocation6], 1 }
 0x1da   :  { %358 = vsyncpa [#allocation4], 1 }
 0x1db   :  { %360 = vsyncpa [#allocation4 + $0x1], 1 }

</bundles_post_ra>
